<compile_context>
chip_gen: v7x
topology: tpu7x:2x2x1
jax: 0.10.0
libtpu: 0.0.40
codegen_flags: <defaults>
</compile_context>

<pallas_src>
import functools

import jax
import jax.numpy as jnp
from jax.experimental import pallas as pl
from jax.experimental.pallas import tpu as pltpu

_LANE = 128


def _round_up(x, m):
    return ((x + m - 1) // m) * m


def _entropic_risk_kernel(x_ref, m_ref, l_ref, *, t, n_total, n_full_rows,
                          row_tile, blocks_per_split, lane):
    """Accumulate a per-lane online log-sum-exp of t*x (plain sums if t == 0).

    x_ref : (row_tile, lane) block of the flattened loss (native dtype).
    m_ref : (8, lane) f32 output block; row 0 = running per-lane max of t*x.
    l_ref : (8, lane) f32 output block; row 0 = per-lane sum(exp(t*x - m))
            (or per-lane sum(x) when t == 0).  Rows 1..7 keep their init
            values (-inf / 0) and are neutral in the JAX-side finalization.
    """
    c = pl.program_id(0)          # core / split index      ("parallel")
    j = pl.program_id(1)          # row-block within split  ("arbitrary")

    @pl.when(j == 0)
    def _init():
        m_ref[...] = jnp.full(m_ref.shape, -jnp.inf, dtype=jnp.float32)
        l_ref[...] = jnp.zeros(l_ref.shape, dtype=jnp.float32)

    blk = c * blocks_per_split + j        # logical row-block id (may run past the end)
    start_row = blk * row_tile

    x = x_ref[...].astype(jnp.float32)    # (row_tile, lane)

    def online_update(tx):
        # tx: (row_tile, lane); invalid entries are already -inf.
        m_prev = m_ref[0:1, :]
        m_new = jnp.maximum(m_prev, jnp.max(tx, axis=0, keepdims=True))
        # Guards keep lanes that have seen no valid element yet (m == -inf)
        # at exactly l == 0 instead of NaN.
        m_safe = jnp.where(m_new == -jnp.inf, jnp.float32(0.0), m_new)
        scale = jnp.where(m_prev == m_new, jnp.float32(1.0),
                          jnp.exp(m_prev - m_new))
        p_sum = jnp.sum(jnp.exp(tx - m_safe), axis=0, keepdims=True)
        l_ref[0:1, :] = l_ref[0:1, :] * scale + p_sum
        m_ref[0:1, :] = m_new

    def sum_update(xv):
        l_ref[0:1, :] = l_ref[0:1, :] + jnp.sum(xv, axis=0, keepdims=True)

    # A block is "full" iff every one of its row_tile*lane elements is a real
    # (unpadded, in-range) loss element; only then do we skip the mask work.
    is_full = (blk + 1) * row_tile <= n_full_rows

    if t == 0:
        @pl.when(is_full)
        def _full():
            sum_update(x)

        @pl.when(jnp.logical_not(is_full))
        def _masked():
            rows = jax.lax.broadcasted_iota(jnp.int32, (row_tile, lane), 0)
            cols = jax.lax.broadcasted_iota(jnp.int32, (row_tile, lane), 1)
            valid = (start_row + rows) * lane + cols < n_total
            sum_update(jnp.where(valid, x, jnp.float32(0.0)))
    else:
        tx = jnp.float32(t) * x

        @pl.when(is_full)
        def _full():
            online_update(tx)

        @pl.when(jnp.logical_not(is_full))
        def _masked():
            rows = jax.lax.broadcasted_iota(jnp.int32, (row_tile, lane), 0)
            cols = jax.lax.broadcasted_iota(jnp.int32, (row_tile, lane), 1)
            valid = (start_row + rows) * lane + cols < n_total
            online_update(jnp.where(valid, tx, -jnp.inf))


def entropic_risk(loss, t=10, reduction="mean", *, row_tile=2048, num_splits=2,
                  min_pallas_elems=4096, vmem_limit_bytes=32 * 1024 * 1024):
    """JAX/Pallas equivalent of EntropicRisk(t, reduction).forward(loss)."""
    if t != 0 and reduction != "mean":
        raise Exception("Only mean reduction type supported.")

    loss = jnp.asarray(loss)
    n_total = int(loss.size)
    lane = _LANE

    # Tiny inputs: pallas launch + grid overhead dominates; let XLA fuse it.
    if n_total < max(int(min_pallas_elems), lane):
        x = loss.astype(jnp.float32).reshape(-1)
        if t == 0:
            return jnp.mean(x)
        tx = jnp.float32(t) * x
        m = jnp.max(tx)
        return (m + jnp.log(jnp.mean(jnp.exp(tx - m)))) / t

    flat = loss.reshape(-1)                      # layout-only; keep native dtype
    pad = (-n_total) % lane
    if pad:
        # TODO(synk): this <128-element pad still costs one extra HBM pass when
        # n_total is not a multiple of 128; the padded entries themselves are
        # masked out inside the kernel (so any finite pad value is safe for
        # positive *and* negative t).
        flat = jnp.pad(flat, (0, pad))
    n_rows = flat.size // lane
    x2d = flat.reshape(n_rows, lane)

    # Sublane alignment depends on dtype packing (f32: 8, bf16: 16, int8: 32).
    itemsize = max(1, jnp.dtype(loss.dtype).itemsize)
    sublane = 8 * max(1, 4 // itemsize)
    row_tile = max(sublane, min(_round_up(int(row_tile), sublane),
                                _round_up(n_rows, sublane)))
    n_blocks = pl.cdiv(n_rows, row_tile)
    num_splits = max(1, min(int(num_splits), n_blocks))
    blocks_per_split = pl.cdiv(n_blocks, num_splits)

    kernel = functools.partial(
        _entropic_risk_kernel, t=t, n_total=n_total,
        n_full_rows=n_total // lane, row_tile=row_tile,
        blocks_per_split=blocks_per_split, lane=lane)

    def in_index_map(c, j):
        # Clamp so a split whose tail blocks run past the end just re-reads the
        # last real block; those steps are fully masked inside the kernel.
        return (jnp.minimum(c * blocks_per_split + j, n_blocks - 1), 0)

    out_spec = pl.BlockSpec((8, lane), lambda c, j: (c, 0))
    out_shape = (jax.ShapeDtypeStruct((num_splits * 8, lane), jnp.float32),
                 jax.ShapeDtypeStruct((num_splits * 8, lane), jnp.float32))

    m_out, l_out = pl.pallas_call(
        kernel,
        out_shape=out_shape,
        grid_spec=pltpu.PrefetchScalarGridSpec(
            num_scalar_prefetch=0,
            grid=(num_splits, blocks_per_split),
            in_specs=[pl.BlockSpec((row_tile, lane), in_index_map)],
            out_specs=(out_spec, out_spec),
        ),
        compiler_params=pltpu.CompilerParams(
            dimension_semantics=("parallel", "arbitrary"),
            vmem_limit_bytes=int(vmem_limit_bytes),
        ),
    )(x2d)

    if t == 0:
        return jnp.sum(l_out) / jnp.float32(n_total)

    # Finalize in plain JAX on the tiny partials: untouched rows carry
    # (m = -inf, l = 0) and contribute exactly 0.
    m_max = jnp.max(m_out)
    z = jnp.sum(l_out * jnp.exp(m_out - m_max))
    return (m_max + jnp.log(z / jnp.float32(n_total))) / t


def _reference(loss, t):
    """Plain-JAX, numerically-stable version of torch's EntropicRisk.forward."""
    x = jnp.asarray(loss).astype(jnp.float32).reshape(-1)
    if t == 0:
        return jnp.mean(x)
    tx = jnp.float32(t) * x
    m = jnp.max(tx)
    return (m + jnp.log(jnp.mean(jnp.exp(tx - m)))) / t


if __name__ == "__main__":
    key = jax.random.PRNGKey(0)
    k1, k2, k3, k4 = jax.random.split(key, 4)

    checks = []

    # 1) Tiny input (2*4*16*16 = 2048 elems): XLA fallback path.
    loss_a = jax.random.uniform(k1, (2, 4, 16, 16), dtype=jnp.float32)
    checks.append(("small/fallback",
                   entropic_risk(loss_a, t=10), _reference(loss_a, 10), 1e-5))

    # 2) Kernel path, default tiling, f32, t = 10.
    loss_b = jax.random.uniform(k2, (8, 4, 32, 32), dtype=jnp.float32)
    checks.append(("kernel/default",
                   entropic_risk(loss_b, t=10), _reference(loss_b, 10), 1e-5))

    # 3) Kernel path, several row-blocks + 2-way split; values large enough that
    #    a naive sum(exp(t*x)) would overflow f32 (exercises the online LSE).
    loss_c = 30.0 * jax.random.uniform(k3, (8, 4, 32, 32), dtype=jnp.float32)
    checks.append(("kernel/overflow",
                   entropic_risk(loss_c, t=10, row_tile=64),
                   _reference(loss_c, 10), 1e-5))

    # 4) Ragged element count (5005, not a multiple of 128), bf16 input, t < 0.
    loss_d = jax.random.normal(k4, (5, 7, 13, 11),
                               dtype=jnp.float32).astype(jnp.bfloat16)
    checks.append(("kernel/ragged_bf16",
                   entropic_risk(loss_d, t=-3.5, row_tile=16),
                   _reference(loss_d, -3.5), 1e-4))

    # 5) t == 0 -> plain mean, kernel path.
    checks.append(("kernel/t0",
                   entropic_risk(loss_b, t=0, row_tile=64),
                   jnp.mean(loss_b), 1e-5))

    for name, got, want, tol in checks:
        got = jax.block_until_ready(got)
        want = jax.block_until_ready(want)
        assert jnp.allclose(got, want, rtol=tol, atol=tol), (name, got, want)

    print("KERNEL_OK")
</pallas_src>

<mosaic_0001>
module attributes {stable_mosaic.version = 11 : i64} {
  func.func @_entropic_risk_kernel(%arg0: i32, %arg1: i32, %arg2: memref<256x128xf32, #tpu.memory_space<vmem>>, %arg3: memref<8x128xf32, #tpu.memory_space<vmem>>, %arg4: memref<8x128xf32, #tpu.memory_space<vmem>>) attributes {dimension_semantics = [#tpu.dimension_semantics<parallel>, #tpu.dimension_semantics<arbitrary>], iteration_bounds = array<i64: 1, 1>, scalar_prefetch = 0 : i64, scratch_operands = 0 : i64, tpu.core_type = #tpu.core_type<tc>, window_params = [{transform_indices = @transform_0, window_bounds = array<i64: 256, 128>}, {transform_indices = @transform_1, window_bounds = array<i64: 8, 128>}, {transform_indices = @transform_2, window_bounds = array<i64: 8, 128>}]} {
    %c0_i32 = arith.constant 0 : i32
    %0 = arith.cmpi eq, %arg1, %c0_i32 : i32
    %1 = arith.extui %0 : i1 to i32
    %c0_i32_0 = arith.constant 0 : i32
    %2 = arith.cmpi ne, %1, %c0_i32_0 : i32
    scf.if %2 {
      %cst_7 = arith.constant 0xFF800000 : f32
      %17 = vector.broadcast %cst_7 : f32 to vector<8x128xf32>
      %c0_8 = arith.constant 0 : index
      %c0_9 = arith.constant 0 : index
      %18 = vector.load %arg3[%c0_8, %c0_9] : memref<8x128xf32, #tpu.memory_space<vmem>>, vector<8x128xf32>
      tpu.vector_store %arg3[%c0_8, %c0_9], %17 {strides = array<i32>} : memref<8x128xf32, #tpu.memory_space<vmem>>, vector<8x128xf32>,
      %cst_10 = arith.constant 0.000000e+00 : f32
      %19 = vector.broadcast %cst_10 : f32 to vector<8x128xf32>
      %c0_11 = arith.constant 0 : index
      %c0_12 = arith.constant 0 : index
      %20 = vector.load %arg4[%c0_11, %c0_12] : memref<8x128xf32, #tpu.memory_space<vmem>>, vector<8x128xf32>
      tpu.vector_store %arg4[%c0_11, %c0_12], %19 {strides = array<i32>} : memref<8x128xf32, #tpu.memory_space<vmem>>, vector<8x128xf32>,
    } else {
    }
    %c1_i32 = arith.constant 1 : i32
    %3 = arith.muli %arg0, %c1_i32 : i32
    %4 = arith.addi %3, %arg1 : i32
    %c256_i32 = arith.constant 256 : i32
    %5 = arith.muli %4, %c256_i32 : i32
    %c0 = arith.constant 0 : index
    %c0_1 = arith.constant 0 : index
    %6 = vector.load %arg2[%c0, %c0_1] : memref<256x128xf32, #tpu.memory_space<vmem>>, vector<256x128xf32>
    %c1_i32_2 = arith.constant 1 : i32
    %7 = arith.addi %4, %c1_i32_2 : i32
    %c256_i32_3 = arith.constant 256 : i32
    %8 = arith.muli %7, %c256_i32_3 : i32
    %c256_i32_4 = arith.constant 256 : i32
    %9 = arith.cmpi sle, %8, %c256_i32_4 : i32
    %cst = arith.constant 1.000000e+01 : f32
    %10 = vector.broadcast %cst : f32 to vector<256x128xf32>
    %11 = arith.mulf %10, %6 : vector<256x128xf32>
    %12 = arith.extui %9 : i1 to i32
    %c0_i32_5 = arith.constant 0 : i32
    %13 = arith.cmpi ne, %12, %c0_i32_5 : i32
    scf.if %13 {
      %c0_7 = arith.constant 0 : index
      %c0_8 = arith.constant 0 : index
      %17 = vector.load %arg3[%c0_7, %c0_8] : memref<8x128xf32, #tpu.memory_space<vmem>>, vector<1x128xf32>
      %cst_9 = arith.constant dense<0xFF800000> : vector<128xf32>
      %18 = vector.multi_reduction <maximumf>, %11, %cst_9 [0] : vector<256x128xf32> to vector<128xf32>
      %19 = vector.shape_cast %18 : vector<128xf32> to vector<1x128xf32>
      %20 = arith.maximumf %17, %19 : vector<1x128xf32>
      %cst_10 = arith.constant 0xFF800000 : f32
      %21 = vector.broadcast %cst_10 : f32 to vector<1x128xf32>
      %22 = arith.cmpf oeq, %20, %21 : vector<1x128xf32>
      %cst_11 = arith.constant 0.000000e+00 : f32
      %23 = vector.broadcast %cst_11 : f32 to vector<1x128xf32>
      %24 = arith.select %22, %23, %20 : vector<1x128xi1>, vector<1x128xf32>
      %25 = arith.cmpf oeq, %17, %20 : vector<1x128xf32>
      %26 = arith.subf %17, %20 : vector<1x128xf32>
      %27 = math.exp %26 : vector<1x128xf32>
      %cst_12 = arith.constant 1.000000e+00 : f32
      %28 = vector.broadcast %cst_12 : f32 to vector<1x128xf32>
      %29 = arith.select %25, %28, %27 : vector<1x128xi1>, vector<1x128xf32>
      %30 = vector.broadcast %24 : vector<1x128xf32> to vector<256x128xf32>
      %31 = arith.subf %11, %30 : vector<256x128xf32>
      %32 = math.exp %31 : vector<256x128xf32>
      %cst_13 = arith.constant dense<0.000000e+00> : vector<128xf32>
      %33 = vector.multi_reduction <add>, %32, %cst_13 [0] : vector<256x128xf32> to vector<128xf32>
      %34 = vector.shape_cast %33 : vector<128xf32> to vector<1x128xf32>
      %c0_14 = arith.constant 0 : index
      %c0_15 = arith.constant 0 : index
      %35 = vector.load %arg4[%c0_14, %c0_15] : memref<8x128xf32, #tpu.memory_space<vmem>>, vector<1x128xf32>
      %36 = arith.mulf %35, %29 : vector<1x128xf32>
      %37 = arith.addf %36, %34 : vector<1x128xf32>
      %c0_16 = arith.constant 0 : index
      %c0_17 = arith.constant 0 : index
      %38 = vector.load %arg4[%c0_16, %c0_17] : memref<8x128xf32, #tpu.memory_space<vmem>>, vector<1x128xf32>
      tpu.vector_store %arg4[%c0_16, %c0_17], %37 {strides = array<i32>} : memref<8x128xf32, #tpu.memory_space<vmem>>, vector<1x128xf32>,
      %c0_18 = arith.constant 0 : index
      %c0_19 = arith.constant 0 : index
      %39 = vector.load %arg3[%c0_18, %c0_19] : memref<8x128xf32, #tpu.memory_space<vmem>>, vector<1x128xf32>
      tpu.vector_store %arg3[%c0_18, %c0_19], %20 {strides = array<i32>} : memref<8x128xf32, #tpu.memory_space<vmem>>, vector<1x128xf32>,
    } else {
    }
    %true = arith.constant true
    %14 = arith.xori %9, %true : i1
    %15 = arith.extui %14 : i1 to i32
    %c0_i32_6 = arith.constant 0 : i32
    %16 = arith.cmpi ne, %15, %c0_i32_6 : i32
    scf.if %16 {
      %17 = tpu.iota {dimensions = array<i32: 0>} : vector<256x128xi32>
      %18 = tpu.iota {dimensions = array<i32: 1>} : vector<256x128xi32>
      %19 = vector.broadcast %5 : i32 to vector<256x128xi32>
      %20 = arith.addi %19, %17 : vector<256x128xi32>
      %c128_i32 = arith.constant 128 : i32
      %21 = vector.broadcast %c128_i32 : i32 to vector<256x128xi32>
      %22 = arith.muli %20, %21 : vector<256x128xi32>
      %23 = arith.addi %22, %18 : vector<256x128xi32>
      %c32768_i32 = arith.constant 32768 : i32
      %24 = vector.broadcast %c32768_i32 : i32 to vector<256x128xi32>
      %25 = arith.cmpi slt, %23, %24 : vector<256x128xi32>
      %cst_7 = arith.constant 0xFF800000 : f32
      %26 = vector.broadcast %cst_7 : f32 to vector<256x128xf32>
      %27 = arith.select %25, %11, %26 : vector<256x128xi1>, vector<256x128xf32>
      %c0_8 = arith.constant 0 : index
      %c0_9 = arith.constant 0 : index
      %28 = vector.load %arg3[%c0_8, %c0_9] : memref<8x128xf32, #tpu.memory_space<vmem>>, vector<1x128xf32>
      %cst_10 = arith.constant dense<0xFF800000> : vector<128xf32>
      %29 = vector.multi_reduction <maximumf>, %27, %cst_10 [0] : vector<256x128xf32> to vector<128xf32>
      %30 = vector.shape_cast %29 : vector<128xf32> to vector<1x128xf32>
      %31 = arith.maximumf %28, %30 : vector<1x128xf32>
      %cst_11 = arith.constant 0xFF800000 : f32
      %32 = vector.broadcast %cst_11 : f32 to vector<1x128xf32>
      %33 = arith.cmpf oeq, %31, %32 : vector<1x128xf32>
      %cst_12 = arith.constant 0.000000e+00 : f32
      %34 = vector.broadcast %cst_12 : f32 to vector<1x128xf32>
      %35 = arith.select %33, %34, %31 : vector<1x128xi1>, vector<1x128xf32>
      %36 = arith.cmpf oeq, %28, %31 : vector<1x128xf32>
      %37 = arith.subf %28, %31 : vector<1x128xf32>
      %38 = math.exp %37 : vector<1x128xf32>
      %cst_13 = arith.constant 1.000000e+00 : f32
      %39 = vector.broadcast %cst_13 : f32 to vector<1x128xf32>
      %40 = arith.select %36, %39, %38 : vector<1x128xi1>, vector<1x128xf32>
      %41 = vector.broadcast %35 : vector<1x128xf32> to vector<256x128xf32>
      %42 = arith.subf %27, %41 : vector<256x128xf32>
      %43 = math.exp %42 : vector<256x128xf32>
      %cst_14 = arith.constant dense<0.000000e+00> : vector<128xf32>
      %44 = vector.multi_reduction <add>, %43, %cst_14 [0] : vector<256x128xf32> to vector<128xf32>
      %45 = vector.shape_cast %44 : vector<128xf32> to vector<1x128xf32>
      %c0_15 = arith.constant 0 : index
      %c0_16 = arith.constant 0 : index
      %46 = vector.load %arg4[%c0_15, %c0_16] : memref<8x128xf32, #tpu.memory_space<vmem>>, vector<1x128xf32>
      %47 = arith.mulf %46, %40 : vector<1x128xf32>
      %48 = arith.addf %47, %45 : vector<1x128xf32>
      %c0_17 = arith.constant 0 : index
      %c0_18 = arith.constant 0 : index
      %49 = vector.load %arg4[%c0_17, %c0_18] : memref<8x128xf32, #tpu.memory_space<vmem>>, vector<1x128xf32>
      tpu.vector_store %arg4[%c0_17, %c0_18], %48 {strides = array<i32>} : memref<8x128xf32, #tpu.memory_space<vmem>>, vector<1x128xf32>,
      %c0_19 = arith.constant 0 : index
      %c0_20 = arith.constant 0 : index
      %50 = vector.load %arg3[%c0_19, %c0_20] : memref<8x128xf32, #tpu.memory_space<vmem>>, vector<1x128xf32>
      tpu.vector_store %arg3[%c0_19, %c0_20], %31 {strides = array<i32>} : memref<8x128xf32, #tpu.memory_space<vmem>>, vector<1x128xf32>,
    } else {
    }
    return
  }
  func.func @transform_0(%arg0: i32, %arg1: i32) -> (i32, i32) {
    %c1_i32 = arith.constant 1 : i32
    %0 = arith.muli %arg0, %c1_i32 : i32
    %1 = arith.addi %0, %arg1 : i32
    %c0_i32 = arith.constant 0 : i32
    %2 = arith.minsi %1, %c0_i32 : i32
    %c0_i32_0 = arith.constant 0 : i32
    %c0_i32_1 = arith.constant 0 : i32
    return %2, %c0_i32_0 : i32, i32
  }
  func.func @transform_1(%arg0: i32, %arg1: i32) -> (i32, i32) {
    %c0_i32 = arith.constant 0 : i32
    %c0_i32_0 = arith.constant 0 : i32
    return %arg0, %c0_i32 : i32, i32
  }
  func.func @transform_2(%arg0: i32, %arg1: i32) -> (i32, i32) {
    %c0_i32 = arith.constant 0 : i32
    %c0_i32_0 = arith.constant 0 : i32
    return %arg0, %c0_i32 : i32, i32
  }
}

</mosaic_0001>

<bundles_post_ra>
// kernel: tpu_custom_call.1
= control target key start
LH: loop header
LB: loop body
LE: loop exit
PB: predicated region body
PF: predicated region fallthrough
CT: control target
= control target key end

     0   :  { %8 = vsyncpa [#allocation3], 0  ;;  %s1090_s0 = inlined_call_operand.hbm [shape: f32[256,128], index: 0, kind: input, shape index: {}]   ;;  %s1091_s1 = inlined_call_operand.hbm [shape: f32[8,128], index: 1, kind: output, shape index: {0}]   ;;  %s1092_s2 = inlined_call_operand.hbm [shape: f32[8,128], index: 2, kind: output, shape index: {1}]  }
   0x1   :  { %9 = vsyncpa [#allocation4], 0 }
   0x2   :  { %10 = vsyncpa [#allocation7], 0  ;;  %s866_s9 = smov [#allocation2]   ;;  %s794_s13 = scalar_lea.hbm %s1090_s0, 4096 }
   0x3   :  { %s22_s10 = sshll.u32 %s866_s9, 4  ;;  %p795_p0 = scmp.ne.s32.totalorder %s1090_s0, %s794_s13  ;;  %s23_s10 = int_to_ptr.vmem [resolvable:$true] %s22_s10 }
   0x4   :  { %p798_p1 = scmp.lt.u32.totalorder %s794_s13, %s1090_s0 }
   0x6   :  { %p800_p2 = pnand %p798_p1, %p795_p0 }
   0x8   :  { %803 = shalt.err (!%p800_p2)
}
   0x9   :  { %s804_s18 = scalar_lea.vmem %s23_s10, 4096  ;;  %p809_p4 = scmp.lt.s32.totalorder %s23_s10, %s23_s10 }
   0xa   :  { %p805_p3 = scmp.ne.s32.totalorder %s23_s10, %s804_s18  ;;  %p810_p5 = scmp.lt.s32.totalorder %s804_s18, %s804_s18 }
   0xc   :  { %p811_p6 = por %p810_p5, %p809_p4 }
   0xe   :  { %p812_p7 = pnand %p811_p6, %p805_p3 }
  0x10   :  { %815 = shalt.err (!%p812_p7)
}
  0x11   :  { %s867_s19 = smov 128   ;;  %s868_s20 = smov 8  }
  0x12   :  { %28 = dma.hbm_to_vmem [thread:$0]  %s1090_s0, 4096, %s23_s10, [#allocation3], %s867_s19, %s867_s19, %s868_s20  }
  0x13   :  { %860 = dma.done.wait [#allocation3], 4096  }
  0x14   :  { %861 = vsyncadd [#allocation3], 4294963200  ;;  %v869_v0 = vmov -inf   ;;  %v870_v1 = vmov 0.0   ;;  %v44_v2 = vld [vmem:[#allocation2] sm:$0xff]  ;;  %v45_v3 = vld [vmem:[#allocation2 + $0x8] sm:$0xff] }
  0x15   :  { %40 = vst [vmem:[#allocation5] sm:$0xff] %v869_v0  ;;  %41 = vst [vmem:[#allocation6] sm:$0xff] %v870_v1  ;;  %v46_v4 = vld [vmem:[#allocation2 + $0x10] sm:$0xff]  ;;  %v47_v5 = vld [vmem:[#allocation2 + $0x18] sm:$0xff]  ;;  %v900_v8 = vmul.f32 10.0, %v44_v2  ;;  %v902_v9 = vmul.f32 10.0, %v45_v3 }
  0x16   :  { %v48_v6 = vld [vmem:[#allocation2 + $0x20] sm:$0xff]  ;;  %v49_v7 = vld [vmem:[#allocation2 + $0x28] sm:$0xff]  ;;  %v50_v10 = vld [vmem:[#allocation2 + $0x30] sm:$0xff]  ;;  %v904_v13 = vmul.f32 10.0, %v46_v4  ;;  %v910_v18 = vmul.f32 10.0, %v47_v5  ;;  %s871_s0 = smov [#allocation5]  }
  0x17   :  { %v51_v11 = vld [vmem:[#allocation2 + $0x38] sm:$0xff]  ;;  %v52_v12 = vld [vmem:[#allocation2 + $0x40] sm:$0xff]  ;;  %v906_v14 = vmul.f32 10.0, %v48_v6  ;;  %v908_v15 = vmul.f32 10.0, %v49_v7  ;;  %v53_v16 = vld [vmem:[#allocation2 + $0x48] sm:$0xff]  ;;  %v912_v19 = vmul.f32 10.0, %v50_v10 }
  0x18   :  { %v54_v17 = vld [vmem:[#allocation2 + $0x50] sm:$0xff]  ;;  %v914_v20 = vmul.f32 10.0, %v51_v11  ;;  %v55_v21 = vld [vmem:[#allocation2 + $0x58] sm:$0xff]  ;;  %v56_v22 = vld [vmem:[#allocation2 + $0x60] sm:$0xff]  ;;  %v916_v23 = vmul.f32 10.0, %v52_v12  ;;  %v920_v27 = vmul.f32 10.0, %v53_v16 }
  0x19   :  { %v115_v24 = vmax.f32 %v900_v8, %v906_v14  ;;  %v57_v25 = vld [vmem:[#allocation2 + $0x68] sm:$0xff]  ;;  %v58_v26 = vld [vmem:[#allocation2 + $0x70] sm:$0xff]  ;;  %v116_v28 = vmax.f32 %v902_v9, %v908_v15  ;;  %v59_v29 = vld [vmem:[#allocation2 + $0x78] sm:$0xff]  ;;  %v924_v31 = vmul.f32 10.0, %v54_v17  ;;  %v117_v32 = vmax.f32 %v904_v13, %v912_v19  ;;  %s696_s23 = sshll.u32 %s871_s0, 4  ;;  %s697_s23 = int_to_ptr.vmem [resolvable:$true] %s696_s23 }
  0x1a   :  { %v60_v30 = vld [vmem:[#allocation2 + $0x80] sm:$0xff]  ;;  %v61_v33 = vld [vmem:[#allocation2 + $0x88] sm:$0xff]  ;;  %v62_v34 = vld [vmem:[#allocation2 + $0x90] sm:$0xff]  ;;  %v928_v35 = vmul.f32 10.0, %v55_v21  ;;  %v930_v36 = vmul.f32 10.0, %v56_v22  ;;  %v118_v37 = vmax.f32 %v910_v18, %v914_v20  ;;  %v934_v40 = vmul.f32 10.0, %v57_v25  ;;  %p821_p9 = scmp.lt.s32.totalorder %s697_s23, %s697_s23 }
  0x1b   :  { %v63_v38 = vld [vmem:[#allocation2 + $0x98] sm:$0xff]  ;;  %v64_v39 = vld [vmem:[#allocation2 + $0xa0] sm:$0xff]  ;;  %v936_v41 = vmul.f32 10.0, %v58_v26  ;;  %v119_v42 = vmax.f32 %v115_v24, %v916_v23  ;;  %v65_v43 = vld [vmem:[#allocation2 + $0xa8] sm:$0xff]  ;;  %v939_v45 = vmul.f32 10.0, %v59_v29  ;;  %v941_v46 = vmul.f32 10.0, %v60_v30 }
  0x1c   :  { %v66_v44 = vld [vmem:[#allocation2 + $0xb0] sm:$0xff]  ;;  %v120_v47 = vmax.f32 %v116_v28, %v920_v27  ;;  %v67_v48 = vld [vmem:[#allocation2 + $0xb8] sm:$0xff]  ;;  %v68_v49 = vld [vmem:[#allocation2 + $0xc0] sm:$0xff]  ;;  %v944_v50 = vmul.f32 10.0, %v61_v33  ;;  %v946_v51 = vmul.f32 10.0, %v62_v34  ;;  %v121_v52 = vmax.f32 %v117_v32, %v924_v31  ;;  %s816_s24 = scalar_lea.vmem %s697_s23, 128 }
  0x1d   :  { %v69_v53 = vld [vmem:[#allocation2 + $0xc8] sm:$0xff]  ;;  %v70_v54 = vld [vmem:[#allocation2 + $0xd0] sm:$0xff]  ;;  %v949_v55 = vmul.f32 10.0, %v63_v38  ;;  %v951_v56 = vmul.f32 10.0, %v64_v39  ;;  %v122_v57 = vmax.f32 %v118_v37, %v928_v35  ;;  %v123_v58 = vmax.f32 %v119_v42, %v930_v36  ;;  %v71_v59 = vld [vmem:[#allocation2 + $0xd8] sm:$0xff]  ;;  %p817_p8 = scmp.ne.s32.totalorder %s697_s23, %s816_s24  ;;  %p822_p10 = scmp.lt.s32.totalorder %s816_s24, %s816_s24 }
  0x1e   :  { %v72_v60 = vld [vmem:[#allocation2 + $0xe0] sm:$0xff]  ;;  %v955_v61 = vmul.f32 10.0, %v65_v43  ;;  %v957_v62 = vmul.f32 10.0, %v66_v44  ;;  %v124_v63 = vmax.f32 %v120_v47, %v934_v40  ;;  %v125_v0 = vmax.f32 %v121_v52, %v936_v41  ;;  %v73_v1 = vld [vmem:[#allocation2 + $0xe8] sm:$0xff]  ;;  %v74_v2 = vld [vmem:[#allocation2 + $0xf0] sm:$0xff] }
  0x1f   :  { %v961_v3 = vmul.f32 10.0, %v67_v48  ;;  %v963_v4 = vmul.f32 10.0, %v68_v49  ;;  %v126_v5 = vmax.f32 %v122_v57, %v939_v45  ;;  %v127_v6 = vmax.f32 %v123_v58, %v941_v46  ;;  %v75_v7 = vld [vmem:[#allocation2 + $0xf8] sm:$0xff]  ;;  %p823_p11 = por %p822_p10, %p821_p9 }
  0x20   :  { %v967_v10 = vmul.f32 10.0, %v69_v53  ;;  %v969_v11 = vmul.f32 10.0, %v70_v54  ;;  %v128_v12 = vmax.f32 %v124_v63, %v944_v50  ;;  %v129_v16 = vmax.f32 %v125_v0, %v946_v51 }
  0x21   :  { %v973_v17 = vmul.f32 10.0, %v71_v59  ;;  %v975_v21 = vmul.f32 10.0, %v72_v60  ;;  %v130_v22 = vmax.f32 %v126_v5, %v949_v55  ;;  %v131_v24 = vmax.f32 %v127_v6, %v951_v56  ;;  %v114_v60 = vld [vmem:[#allocation5] sm:$0x1]  ;;  %p824_p12 = pnand %p823_p11, %p817_p8 }
  0x22   :  { %v979_v25 = vmul.f32 10.0, %v73_v1  ;;  %v981_v26 = vmul.f32 10.0, %v74_v2  ;;  %v132_v28 = vmax.f32 %v128_v12, %v955_v61  ;;  %v133_v29 = vmax.f32 %v129_v16, %v957_v62 }
  0x23   :  { %v985_v30 = vmul.f32 10.0, %v75_v7  ;;  %v134_v32 = vmax.f32 %v130_v22, %v961_v3  ;;  %v135_v33 = vmax.f32 %v131_v24, %v963_v4  ;;  %v160_v58 = vlaneseq }
  0x24   :  { %v136_v34 = vmax.f32 %v132_v28, %v967_v10  ;;  %v137_v37 = vmax.f32 %v133_v29, %v969_v11 }
  0x25   :  { %v138_v38 = vmax.f32 %v134_v32, %v973_v17  ;;  %v139_v39 = vmax.f32 %v135_v33, %v975_v21  ;;  %v161_v0 = vshrl.u32 %v160_v58, 7 }
  0x26   :  { %v140_v42 = vmax.f32 %v136_v34, %v979_v25  ;;  %v141_v43 = vmax.f32 %v137_v37, %v981_v26 }
  0x27   :  { %v142_v44 = vmax.f32 %v138_v38, %v985_v30  ;;  %v162_v5 = vsub.s32 0, %v161_v0 }
  0x28   :  { %v143_v47 = vmax.f32 %v139_v39, %v140_v42 }
  0x29   :  { %v144_v48 = vmax.f32 %v141_v43, %v142_v44 }
  0x2b   :  { %v145_v49 = vmax.f32 %v143_v47, %v144_v48 }
  0x2d   :  { %v146_v52 = vrot.slane %v145_v49, 4 }
  0x2f   :  { %v147_v53 = vmax.f32 %v145_v49, %v146_v52 }
  0x31   :  { %v148_v54 = vrot.slane %v147_v53, 2 }
  0x33   :  { %v149_v57 = vmax.f32 %v147_v53, %v148_v54 }
  0x35   :  { %v150_v59 = vrot.slane %v149_v57, 1 }
  0x37   :  { %v151_v63 = vmax.f32 %v149_v57, %v150_v59 }
  0x39   :  { %v152_v1 = vmax.f32 %v114_v60, %v151_v63 }
  0x3b   :  { %vm153_vm0 = vcmp.eq.f32.partialorder %v152_v1, -inf  ;;  %v156_v2 = vsub.f32 %v114_v60, %v152_v1  ;;  %301 = vst [vmem:[#allocation5] sm:$0x1] %v152_v1  ;;  %vm155_vm1 = vcmp.eq.f32.partialorder %v114_v60, %v152_v1 }
  0x3c   :  { %v154_v6 = vsel %vm153_vm0, 0.0, %v152_v1 }
  0x3d   :  { %827 = shalt.err (!%p824_p12)
}
  0x3e   :  { %s828_s27 = scalar_lea.hbm %s1091_s1, 128 }
  0x3f   :  { %p829_p13 = scmp.ne.s32.totalorder %s1091_s1, %s828_s27  ;;  %p832_p0 = scmp.lt.u32.totalorder %s828_s27, %s1091_s1 }
  0x41   :  { %p834_p1 = pnand %p832_p0, %p829_p13 }
  0x43   :  { %837 = shalt.err (!%p834_p1)
}
  0x44   :  { %699 = dma.vmem_to_hbm [thread:$0]  %s697_s23, 128, %s1091_s1, [#allocation4]   ;;  %v1008_v7 = vrot.slane %v154_v6, %v162_v5  ;;  %v157_v12 = vmul.f32 1.442695, %v156_v2 }
  0x45   :  { %s872_s1 = smov [#allocation6]  }
  0x46   :  { %v164_v16 = vsub.f32 %v900_v8, %v1008_v7  ;;  %v165_v22 = vsub.f32 %v902_v9, %v1008_v7  ;;  %728 = vpow2.f32 %v157_v12  ;;  %v166_v24 = vsub.f32 %v904_v13, %v1008_v7  ;;  %s706_s6 = sshll.u32 %s872_s1, 4  ;;  %s707_s6 = int_to_ptr.vmem [resolvable:$true] %s706_s6 }
  0x47   :  { %v167_v28 = vsub.f32 %v910_v18, %v1008_v7  ;;  %v168_v33 = vsub.f32 %v906_v14, %v1008_v7  ;;  %v169_v8 = vsub.f32 %v908_v15, %v1008_v7  ;;  %v170_v9 = vsub.f32 %v912_v19, %v1008_v7  ;;  %s838_s7 = scalar_lea.vmem %s707_s6, 128  ;;  %p843_p3 = scmp.lt.s32.totalorder %s707_s6, %s707_s6 }
  0x48   :  { %v196_v29 = vmul.f32 1.442695, %v164_v16  ;;  %v198_v32 = vmul.f32 1.442695, %v165_v22  ;;  %v200_v34 = vmul.f32 1.442695, %v166_v24  ;;  %v171_v18 = vsub.f32 %v914_v20, %v1008_v7  ;;  %p839_p2 = scmp.ne.s32.totalorder %s707_s6, %s838_s7  ;;  %p844_p4 = scmp.lt.s32.totalorder %s838_s7, %s838_s7 }
  0x49   :  { %v202_v37 = vmul.f32 1.442695, %v167_v28  ;;  %v204_v13 = vmul.f32 1.442695, %v168_v33  ;;  %v206_v39 = vmul.f32 1.442695, %v169_v8  ;;  %v172_v14 = vsub.f32 %v916_v23, %v1008_v7 }
  0x4a   :  { %730 = vpow2.f32 %v196_v29  ;;  %v208_v42 = vmul.f32 1.442695, %v170_v9  ;;  %v173_v43 = vsub.f32 %v920_v27, %v1008_v7  ;;  %v210_v19 = vmul.f32 1.442695, %v171_v18  ;;  %p845_p5 = por %p844_p4, %p843_p3 }
  0x4b   :  { %732 = vpow2.f32 %v198_v32  ;;  %v174_v20 = vsub.f32 %v924_v31, %v1008_v7  ;;  %v212_v48 = vmul.f32 1.442695, %v172_v14  ;;  %v175_v23 = vsub.f32 %v928_v35, %v1008_v7 }
  0x4c   :  { %734 = vpow2.f32 %v200_v34  ;;  %v214_v53 = vmul.f32 1.442695, %v173_v43  ;;  %v176_v27 = vsub.f32 %v930_v36, %v1008_v7  ;;  %v177_v31 = vsub.f32 %v934_v40, %v1008_v7  ;;  %p846_p6 = pnand %p845_p5, %p839_p2 }
  0x4d   :  { %736 = vpow2.f32 %v202_v37  ;;  %v216_v58 = vmul.f32 1.442695, %v174_v20  ;;  %v218_v63 = vmul.f32 1.442695, %v175_v23  ;;  %v178_v35 = vsub.f32 %v936_v41, %v1008_v7 }
  0x4e   :  { %738 = vpow2.f32 %v204_v13  ;;  %v220_v2 = vmul.f32 1.442695, %v176_v27  ;;  %v179_v36 = vsub.f32 %v939_v45, %v1008_v7  ;;  %v222_v12 = vmul.f32 1.442695, %v177_v31 }
  0x4f   :  { %740 = vpow2.f32 %v206_v39  ;;  %v180_v40 = vsub.f32 %v941_v46, %v1008_v7  ;;  %v224_v24 = vmul.f32 1.442695, %v178_v35  ;;  %v181_v41 = vsub.f32 %v944_v50, %v1008_v7 }
  0x50   :  { %v729_v38 = vpop.eup %728  ;;  %742 = vpow2.f32 %v208_v42  ;;  %v226_v32 = vmul.f32 1.442695, %v179_v36  ;;  %v182_v45 = vsub.f32 %v946_v51, %v1008_v7  ;;  %v183_v46 = vsub.f32 %v949_v55, %v1008_v7 }
  0x51   :  { %v1029_v15 = vsel %vm155_vm1, 1.0, %v729_v38  ;;  %744 = vpow2.f32 %v210_v19  ;;  %v228_v8 = vmul.f32 1.442695, %v180_v40  ;;  %v230_v13 = vmul.f32 1.442695, %v181_v41 }
  0x52   :  { %746 = vpow2.f32 %v212_v48  ;;  %v184_v50 = vsub.f32 %v951_v56, %v1008_v7  ;;  %v232_v39 = vmul.f32 1.442695, %v182_v45  ;;  %v185_v51 = vsub.f32 %v955_v61, %v1008_v7 }
  0x53   :  { %748 = vpow2.f32 %v214_v53  ;;  %v234_v43 = vmul.f32 1.442695, %v183_v46  ;;  %v186_v55 = vsub.f32 %v957_v62, %v1008_v7  ;;  %v187_v56 = vsub.f32 %v961_v3, %v1008_v7 }
  0x54   :  { %v731_v44 = vpop.eup %730  ;;  %750 = vpow2.f32 %v216_v58  ;;  %v188_v61 = vsub.f32 %v963_v4, %v1008_v7  ;;  %v189_v62 = vsub.f32 %v967_v10, %v1008_v7  ;;  %v190_v3 = vsub.f32 %v969_v11, %v1008_v7 }
  0x55   :  { %v733_v47 = vpop.eup %732  ;;  %752 = vpow2.f32 %v218_v63  ;;  %v240_v53 = vmul.f32 1.442695, %v186_v55  ;;  %v242_v27 = vmul.f32 1.442695, %v187_v56  ;;  %v191_v4 = vsub.f32 %v973_v17, %v1008_v7  ;;  %v297_v55 = vld [vmem:[#allocation6] sm:$0x1] }
  0x56   :  { %v260_v49 = vadd.f32 %v733_v47, %v731_v44  ;;  %v735_v52 = vpop.eup %734  ;;  %754 = vpow2.f32 %v220_v2  ;;  %v236_v47 = vmul.f32 1.442695, %v184_v50  ;;  %v192_v10 = vsub.f32 %v975_v21, %v1008_v7 }
  0x57   :  { %v737_v57 = vpop.eup %736  ;;  %756 = vpow2.f32 %v222_v12  ;;  %v248_v2 = vmul.f32 1.442695, %v190_v3  ;;  %v193_v11 = vsub.f32 %v979_v25, %v1008_v7  ;;  %v250_v36 = vmul.f32 1.442695, %v191_v4 }
  0x58   :  { %v261_v54 = vadd.f32 %v735_v52, %v260_v49  ;;  %v739_v60 = vpop.eup %738  ;;  %758 = vpow2.f32 %v224_v24  ;;  %v238_v49 = vmul.f32 1.442695, %v185_v51  ;;  %v194_v17 = vsub.f32 %v981_v26, %v1008_v7 }
  0x59   :  { %v741_v1 = vpop.eup %740  ;;  %760 = vpow2.f32 %v226_v32  ;;  %v195_v21 = vsub.f32 %v985_v30, %v1008_v7 }
  0x5a   :  { %v262_v59 = vadd.f32 %v737_v57, %v261_v54  ;;  %v743_v6 = vpop.eup %742  ;;  %762 = vpow2.f32 %v228_v8  ;;  %v256_v25 = vmul.f32 1.442695, %v194_v17 }
  0x5b   :  { %v745_v22 = vpop.eup %744  ;;  %764 = vpow2.f32 %v230_v13 }
  0x5c   :  { %v263_v0 = vadd.f32 %v739_v60, %v262_v59  ;;  %v747_v29 = vpop.eup %746  ;;  %766 = vpow2.f32 %v232_v39  ;;  %v244_v60 = vmul.f32 1.442695, %v188_v61 }
  0x5d   :  { %v749_v34 = vpop.eup %748  ;;  %768 = vpow2.f32 %v234_v43 }
  0x5e   :  { %v264_v5 = vadd.f32 %v741_v1, %v263_v0  ;;  %v751_v9 = vpop.eup %750  ;;  %770 = vpow2.f32 %v236_v47  ;;  %v246_v0 = vmul.f32 1.442695, %v189_v62 }
  0x5f   :  { %v753_v18 = vpop.eup %752  ;;  %772 = vpow2.f32 %v238_v49 }
  0x60   :  { %v265_v16 = vadd.f32 %v743_v6, %v264_v5  ;;  %v755_v42 = vpop.eup %754  ;;  %774 = vpow2.f32 %v240_v53 }
  0x61   :  { %v757_v44 = vpop.eup %756  ;;  %776 = vpow2.f32 %v242_v27 }
  0x62   :  { %v266_v28 = vadd.f32 %v745_v22, %v265_v16  ;;  %v759_v48 = vpop.eup %758  ;;  %778 = vpow2.f32 %v244_v60  ;;  %v252_v22 = vmul.f32 1.442695, %v192_v10 }
  0x63   :  { %v761_v23 = vpop.eup %760  ;;  %780 = vpow2.f32 %v246_v0 }
  0x64   :  { %v267_v33 = vadd.f32 %v747_v29, %v266_v28  ;;  %v763_v57 = vpop.eup %762  ;;  %782 = vpow2.f32 %v248_v2  ;;  %v254_v28 = vmul.f32 1.442695, %v193_v11 }
  0x65   :  { %v765_v59 = vpop.eup %764  ;;  %784 = vpow2.f32 %v250_v36 }
  0x66   :  { %v268_v37 = vadd.f32 %v749_v34, %v267_v33  ;;  %v767_v63 = vpop.eup %766  ;;  %786 = vpow2.f32 %v252_v22  ;;  %v258_v34 = vmul.f32 1.442695, %v195_v21 }
  0x67   :  { %v769_v35 = vpop.eup %768  ;;  %788 = vpow2.f32 %v254_v28 }
  0x68   :  { %v269_v38 = vadd.f32 %v751_v9, %v268_v37  ;;  %v771_v6 = vpop.eup %770  ;;  %790 = vpow2.f32 %v256_v25 }
  0x69   :  { %v773_v16 = vpop.eup %772  ;;  %792 = vpow2.f32 %v258_v34 }
  0x6a   :  { %v270_v14 = vadd.f32 %v753_v18, %v269_v38  ;;  %v775_v24 = vpop.eup %774 }
  0x6b   :  { %v777_v41 = vpop.eup %776 }
  0x6c   :  { %v271_v19 = vadd.f32 %v755_v42, %v270_v14  ;;  %v779_v33 = vpop.eup %778 }
  0x6d   :  { %v781_v8 = vpop.eup %780 }
  0x6e   :  { %v272_v20 = vadd.f32 %v757_v44, %v271_v19  ;;  %v783_v37 = vpop.eup %782 }
  0x6f   :  { %v785_v46 = vpop.eup %784 }
  0x70   :  { %v273_v52 = vadd.f32 %v759_v48, %v272_v20  ;;  %v787_v30 = vpop.eup %786  ;;  %v298_v48 = vmul.f32 %v297_v55, %v1029_v15 }
  0x71   :  { %v789_v38 = vpop.eup %788 }
  0x72   :  { %v274_v54 = vadd.f32 %v761_v23, %v273_v52  ;;  %v791_v50 = vpop.eup %790 }
  0x73   :  { %v793_v14 = vpop.eup %792 }
  0x74   :  { %v275_v58 = vadd.f32 %v763_v57, %v274_v54 }
  0x76   :  { %v276_v31 = vadd.f32 %v765_v59, %v275_v58 }
  0x78   :  { %v277_v1 = vadd.f32 %v767_v63, %v276_v31 }
  0x7a   :  { %v278_v5 = vadd.f32 %v769_v35, %v277_v1 }
  0x7c   :  { %v279_v12 = vadd.f32 %v771_v6, %v278_v5 }
  0x7e   :  { %v280_v40 = vadd.f32 %v773_v16, %v279_v12 }
  0x80   :  { %v281_v29 = vadd.f32 %v775_v24, %v280_v40 }
  0x82   :  { %v282_v32 = vadd.f32 %v777_v41, %v281_v29 }
  0x84   :  { %v283_v45 = vadd.f32 %v779_v33, %v282_v32 }
  0x86   :  { %v284_v26 = vadd.f32 %v781_v8, %v283_v45 }
  0x88   :  { %v285_v9 = vadd.f32 %v783_v37, %v284_v26 }
  0x8a   :  { %v286_v13 = vadd.f32 %v785_v46, %v285_v9 }
  0x8c   :  { %v287_v7 = vadd.f32 %v787_v30, %v286_v13 }
  0x8e   :  { %v288_v18 = vadd.f32 %v789_v38, %v287_v7 }
  0x90   :  { %v289_v39 = vadd.f32 %v791_v50, %v288_v18 }
  0x92   :  { %v290_v42 = vadd.f32 %v793_v14, %v289_v39 }
  0x94   :  { %v291_v51 = vrot.slane %v290_v42, 4 }
  0x96   :  { %v292_v43 = vadd.f32 %v291_v51, %v290_v42 }
  0x98   :  { %v293_v19 = vrot.slane %v292_v43, 2 }
  0x9a   :  { %v294_v44 = vadd.f32 %v293_v19, %v292_v43 }
  0x9c   :  { %v295_v47 = vrot.slane %v294_v44, 1 }
  0x9e   :  { %v296_v20 = vadd.f32 %v295_v47, %v294_v44 }
  0xa0   :  { %v299_v56 = vadd.f32 %v298_v48, %v296_v20 }
  0xa2   :  { %300 = vst [vmem:[#allocation6] sm:$0x1] %v299_v56 }
  0xa3   :  { %849 = shalt.err (!%p846_p6)
}
  0xa4   :  { %s850_s10 = scalar_lea.hbm %s1092_s2, 128 }
  0xa5   :  { %p851_p7 = scmp.ne.s32.totalorder %s1092_s2, %s850_s10  ;;  %p854_p8 = scmp.lt.u32.totalorder %s850_s10, %s1092_s2 }
  0xa7   :  { %p856_p9 = pnand %p854_p8, %p851_p7 }
  0xa9   :  { %859 = shalt.err (!%p856_p9)
}
  0xaa   :  { %709 = dma.vmem_to_hbm [thread:$0]  %s707_s6, 128, %s1092_s2, [#allocation7]  }
  0xab   :  { %862 = dma.done.wait [#allocation4], 128  }
  0xac   :  { %863 = vsyncadd [#allocation4], 4294967168 }
  0xad   :  { %864 = dma.done.wait [#allocation7], 128  }
  0xae   :  { %865 = vsyncadd [#allocation7], 4294967168 }
  0xaf   :  { %716 = vsyncpa [#allocation3], 1 }
  0xb0   :  { %717 = vsyncpa [#allocation4], 1 }
  0xb1   :  { %718 = vsyncpa [#allocation7], 1 }

</bundles_post_ra>
